<compile_context>
chip_gen: v7x
topology: tpu7x:2x2x1
jax: 0.10.0
libtpu: 0.0.40
codegen_flags: <defaults>
</compile_context>

<pallas_src>
import functools

import jax
import jax.numpy as jnp
from jax.experimental import pallas as pl
from jax.experimental.pallas import tpu as pltpu


# ---------------------------------------------------------------------------
# Fused Pallas kernel (one image per grid step)
# ---------------------------------------------------------------------------
def _residual_kernel(x_ref, w1_ref, s1_ref, b1_ref, w2_ref, s2_ref, b2_ref,
                     *rest, H, W, use_proj, compute_dtype):
    """Fused conv1+bn1+relu -> conv2+bn2 -> (+ 1x1 proj) -> add -> relu.

    x_ref : (1, Cin, H*W)        flattened NCHW image (f32)
    w1_ref: (Cout, 9*Cin)        conv1 weights, column = (dy*3+dx)*Cin + cin
    w2_ref: (Cout, 9*Cout)       conv2 weights
    s*/b* : (Cout, 1)            fused BN scale / bias (conv bias folded in), f32
    w3_ref: (Cout, Cin), b3_ref: (Cout, 1)   (only if use_proj)
    o_ref : (1, Cout, H*W)
    scratch: xpf (Cin, HW+2W+2), col1 (9*Cin, HW), ypf (Cout, HW+2W+2), col2 (9*Cout, HW)
    """
    if use_proj:
        w3_ref, b3_ref, o_ref, xpf_ref, col1_ref, ypf_ref, col2_ref = rest
    else:
        o_ref, xpf_ref, col1_ref, ypf_ref, col2_ref = rest

    HW = H * W
    cin = x_ref.shape[1]
    cout = o_ref.shape[1]
    pad = W + 1  # flat offset of pixel (0, 0) inside the flat-padded buffer

    # Lane masks suppressing horizontal wrap-around of the flat layout.
    lane_w = jax.lax.broadcasted_iota(jnp.int32, (1, HW), 1) % W
    keep_left = lane_w > 0          # dx == 0 taps: column w-1 invalid at w == 0
    keep_right = lane_w < (W - 1)   # dx == 2 taps: column w+1 invalid at w == W-1

    def im2col(src_ref, col_ref, c):
        # src_ref: flat-padded (c, HW + 2W + 2); col_ref: (9*c, HW)
        for t in range(9):
            dy, dx = divmod(t, 3)
            start = dy * W + dx                      # static lane offset
            tap = src_ref[:, start:start + HW]
            if dx == 0:
                tap = jnp.where(keep_left, tap, 0)
            elif dx == 2:
                tap = jnp.where(keep_right, tap, 0)
            col_ref[t * c:(t + 1) * c, :] = tap

    x = x_ref[0]                                     # (Cin, HW), f32

    # ---- conv1 (3x3, SAME) + BN1 + ReLU : one matmul, K = 9*Cin ----
    xpf_ref[...] = jnp.zeros_like(xpf_ref)
    xpf_ref[:, pad:pad + HW] = x.astype(compute_dtype)
    im2col(xpf_ref, col1_ref, cin)
    y = jnp.dot(w1_ref[...], col1_ref[...], preferred_element_type=jnp.float32)
    y = jnp.maximum(y * s1_ref[...] + b1_ref[...], 0.0)           # (Cout, HW), f32

    # ---- conv2 (3x3, SAME) + BN2 : Y stays in VMEM ----
    ypf_ref[...] = jnp.zeros_like(ypf_ref)
    ypf_ref[:, pad:pad + HW] = y.astype(compute_dtype)
    im2col(ypf_ref, col2_ref, cout)
    y2 = jnp.dot(w2_ref[...], col2_ref[...], preferred_element_type=jnp.float32)
    y2 = y2 * s2_ref[...] + b2_ref[...]                           # (Cout, HW), f32

    # ---- shortcut (fused 1x1 projection or identity) ----
    if use_proj:
        skip = jnp.dot(w3_ref[...], x.astype(compute_dtype),
                       preferred_element_type=jnp.float32) + b3_ref[...]
    else:
        skip = x.astype(jnp.float32)                              # Cin == Cout

    out = jnp.maximum(y2 + skip, 0.0)                             # (Cout, HW), f32
    o_ref[...] = out.reshape(1, cout, HW).astype(o_ref.dtype)     # lane-dense store


# ---------------------------------------------------------------------------
# Wrapper (glue): PyTorch-layout params, NCHW input/output, no pads, no transposes
# ---------------------------------------------------------------------------
def _fuse_bn(conv_bias, gamma, beta, mean, var, eps=1e-5):
    """Fold conv bias + inference-mode BN into per-channel (scale, bias)."""
    s = gamma / jnp.sqrt(var + eps)
    b = beta + (conv_bias - mean) * s
    return s, b


def residual_forward(x_nchw, params, *, use_1x1conv=False,
                     compute_dtype=jnp.float32, eps=1e-5):
    """Pallas implementation of Residual.forward. Input/output are NCHW (PyTorch)."""
    N, Cin, H, W = x_nchw.shape
    Cout = params["conv1_w"].shape[0]
    HW = H * W
    PADL = HW + 2 * W + 2

    # Conv weights -> (Cout, 9*C) im2col matrices, column index = (dy*3+dx)*C + c.
    w1 = jnp.transpose(params["conv1_w"], (0, 2, 3, 1)).reshape(Cout, 9 * Cin)
    w2 = jnp.transpose(params["conv2_w"], (0, 2, 3, 1)).reshape(Cout, 9 * Cout)
    w1 = w1.astype(compute_dtype)
    w2 = w2.astype(compute_dtype)

    s1, b1 = _fuse_bn(params["conv1_b"], params["bn1_gamma"], params["bn1_beta"],
                      params["bn1_mean"], params["bn1_var"], eps)
    s2, b2 = _fuse_bn(params["conv2_b"], params["bn2_gamma"], params["bn2_beta"],
                      params["bn2_mean"], params["bn2_var"], eps)
    s1 = s1.reshape(Cout, 1).astype(jnp.float32)
    b1 = b1.reshape(Cout, 1).astype(jnp.float32)
    s2 = s2.reshape(Cout, 1).astype(jnp.float32)
    b2 = b2.reshape(Cout, 1).astype(jnp.float32)

    x_flat = x_nchw.reshape(N, Cin, HW)   # free reshape of contiguous NCHW

    args = [x_flat, w1, s1, b1, w2, s2, b2]
    in_specs = [
        pl.BlockSpec((1, Cin, HW), lambda n: (n, 0, 0)),
        pl.BlockSpec((Cout, 9 * Cin), lambda n: (0, 0)),
        pl.BlockSpec((Cout, 1), lambda n: (0, 0)),
        pl.BlockSpec((Cout, 1), lambda n: (0, 0)),
        pl.BlockSpec((Cout, 9 * Cout), lambda n: (0, 0)),
        pl.BlockSpec((Cout, 1), lambda n: (0, 0)),
        pl.BlockSpec((Cout, 1), lambda n: (0, 0)),
    ]
    if use_1x1conv:
        w3 = params["conv3_w"].reshape(Cout, Cin).astype(compute_dtype)
        b3 = params["conv3_b"].reshape(Cout, 1).astype(jnp.float32)
        args += [w3, b3]
        in_specs += [pl.BlockSpec((Cout, Cin), lambda n: (0, 0)),
                     pl.BlockSpec((Cout, 1), lambda n: (0, 0))]

    kernel = functools.partial(_residual_kernel, H=H, W=W,
                               use_proj=use_1x1conv, compute_dtype=compute_dtype)

    out_flat = pl.pallas_call(
        kernel,
        out_shape=jax.ShapeDtypeStruct((N, Cout, HW), x_nchw.dtype),
        grid=(N,),
        in_specs=in_specs,
        out_specs=pl.BlockSpec((1, Cout, HW), lambda n: (n, 0, 0)),
        scratch_shapes=[
            pltpu.VMEM((Cin, PADL), compute_dtype),       # flat-padded input
            pltpu.VMEM((9 * Cin, HW), compute_dtype),     # im2col for conv1
            pltpu.VMEM((Cout, PADL), compute_dtype),      # flat-padded intermediate Y
            pltpu.VMEM((9 * Cout, HW), compute_dtype),    # im2col for conv2
        ],
        compiler_params=pltpu.CompilerParams(dimension_semantics=("parallel",)),
    )(*args)

    return out_flat.reshape(N, Cout, H, W)


# ---------------------------------------------------------------------------
# Pure-JAX reference (PyTorch NCHW / OIHW conventions) for correctness checks
# ---------------------------------------------------------------------------
def residual_reference(x, p, *, use_1x1conv=False, eps=1e-5):
    dn = ("NCHW", "OIHW", "NCHW")

    def conv(x, w, b):
        y = jax.lax.conv_general_dilated(x, w, (1, 1), "SAME", dimension_numbers=dn)
        return y + b.reshape(1, -1, 1, 1)

    def bn(x, g, bt, m, v):
        g, bt, m, v = (a.reshape(1, -1, 1, 1) for a in (g, bt, m, v))
        return (x - m) / jnp.sqrt(v + eps) * g + bt

    y = jax.nn.relu(bn(conv(x, p["conv1_w"], p["conv1_b"]),
                       p["bn1_gamma"], p["bn1_beta"], p["bn1_mean"], p["bn1_var"]))
    y = bn(conv(y, p["conv2_w"], p["conv2_b"]),
           p["bn2_gamma"], p["bn2_beta"], p["bn2_mean"], p["bn2_var"])
    skip = x
    if use_1x1conv:
        skip = conv(x, p["conv3_w"], p["conv3_b"])
    return jax.nn.relu(y + skip)


# ---------------------------------------------------------------------------
def make_params(key, cin, cout, use_1x1conv):
    ks = jax.random.split(key, 14)
    p = {
        "conv1_w": 0.1 * jax.random.normal(ks[0], (cout, cin, 3, 3), jnp.float32),
        "conv1_b": 0.1 * jax.random.normal(ks[1], (cout,), jnp.float32),
        "conv2_w": 0.1 * jax.random.normal(ks[2], (cout, cout, 3, 3), jnp.float32),
        "conv2_b": 0.1 * jax.random.normal(ks[3], (cout,), jnp.float32),
        "bn1_gamma": 1.0 + 0.1 * jax.random.normal(ks[4], (cout,), jnp.float32),
        "bn1_beta": 0.1 * jax.random.normal(ks[5], (cout,), jnp.float32),
        "bn1_mean": 0.1 * jax.random.normal(ks[6], (cout,), jnp.float32),
        "bn1_var": 1.0 + 0.1 * jax.random.uniform(ks[7], (cout,), jnp.float32),
        "bn2_gamma": 1.0 + 0.1 * jax.random.normal(ks[8], (cout,), jnp.float32),
        "bn2_beta": 0.1 * jax.random.normal(ks[9], (cout,), jnp.float32),
        "bn2_mean": 0.1 * jax.random.normal(ks[10], (cout,), jnp.float32),
        "bn2_var": 1.0 + 0.1 * jax.random.uniform(ks[11], (cout,), jnp.float32),
    }
    if use_1x1conv:
        p["conv3_w"] = 0.1 * jax.random.normal(ks[12], (cout, cin, 1, 1), jnp.float32)
        p["conv3_b"] = 0.1 * jax.random.normal(ks[13], (cout,), jnp.float32)
    return p


if __name__ == "__main__":
    key = jax.random.PRNGKey(0)

    # Case 1: identity shortcut (use_1x1conv=False) -> in/out channels must match.
    N, C, H, W = 2, 8, 16, 16
    kx, kp = jax.random.split(key)
    x = jax.random.normal(kx, (N, C, H, W), jnp.float32)          # NCHW like PyTorch
    params = make_params(kp, C, C, use_1x1conv=False)

    out = jax.block_until_ready(residual_forward(x, params, use_1x1conv=False))
    ref = residual_reference(x, params, use_1x1conv=False)
    assert out.shape == (N, C, H, W)
    assert jnp.allclose(out, ref, atol=1e-4, rtol=1e-4), float(jnp.max(jnp.abs(out - ref)))

    # Case 2: projection shortcut (use_1x1conv=True), Cin != Cout.
    Cin2, Cout2 = 4, 8
    kx2, kp2 = jax.random.split(kp)
    x2 = jax.random.normal(kx2, (N, Cin2, H, W), jnp.float32)
    params2 = make_params(kp2, Cin2, Cout2, use_1x1conv=True)

    out2 = jax.block_until_ready(residual_forward(x2, params2, use_1x1conv=True))
    ref2 = residual_reference(x2, params2, use_1x1conv=True)
    assert out2.shape == (N, Cout2, H, W)
    assert jnp.allclose(out2, ref2, atol=1e-4, rtol=1e-4), float(jnp.max(jnp.abs(out2 - ref2)))

    # Case 3: bf16 MXU inputs (weights + im2col patches), f32 accumulation / epilogue.
    out3 = jax.block_until_ready(
        residual_forward(x2, params2, use_1x1conv=True, compute_dtype=jnp.bfloat16))
    assert jnp.allclose(out3, ref2, atol=1e-1, rtol=1e-1), float(jnp.max(jnp.abs(out3 - ref2)))

    print("KERNEL_OK")
</pallas_src>

<mosaic_0001>
module attributes {stable_mosaic.version = 11 : i64} {
  func.func @_residual_kernel(%arg0: i32, %arg1: memref<1x8x256xf32, #tpu.memory_space<vmem>>, %arg2: memref<8x72xf32, #tpu.memory_space<vmem>>, %arg3: memref<8x1xf32, #tpu.memory_space<vmem>>, %arg4: memref<8x1xf32, #tpu.memory_space<vmem>>, %arg5: memref<8x72xf32, #tpu.memory_space<vmem>>, %arg6: memref<8x1xf32, #tpu.memory_space<vmem>>, %arg7: memref<8x1xf32, #tpu.memory_space<vmem>>, %arg8: memref<1x8x256xf32, #tpu.memory_space<vmem>>, %arg9: memref<8x290xf32, #tpu.memory_space<vmem>>, %arg10: memref<72x256xf32, #tpu.memory_space<vmem>>, %arg11: memref<8x290xf32, #tpu.memory_space<vmem>>, %arg12: memref<72x256xf32, #tpu.memory_space<vmem>>) attributes {dimension_semantics = [#tpu.dimension_semantics<parallel>], iteration_bounds = array<i64: 2>, scalar_prefetch = 0 : i64, scratch_operands = 4 : i64, tpu.core_type = #tpu.core_type<tc>, window_params = [{transform_indices = @transform_0, window_bounds = array<i64: 1, 8, 256>}, {pipeline_mode = #tpu.pipeline_mode<synchronous>, transform_indices = @transform_1, window_bounds = array<i64: 8, 72>}, {pipeline_mode = #tpu.pipeline_mode<synchronous>, transform_indices = @transform_2, window_bounds = array<i64: 8, 1>}, {pipeline_mode = #tpu.pipeline_mode<synchronous>, transform_indices = @transform_3, window_bounds = array<i64: 8, 1>}, {pipeline_mode = #tpu.pipeline_mode<synchronous>, transform_indices = @transform_4, window_bounds = array<i64: 8, 72>}, {pipeline_mode = #tpu.pipeline_mode<synchronous>, transform_indices = @transform_5, window_bounds = array<i64: 8, 1>}, {pipeline_mode = #tpu.pipeline_mode<synchronous>, transform_indices = @transform_6, window_bounds = array<i64: 8, 1>}, {transform_indices = @transform_7, window_bounds = array<i64: 1, 8, 256>}]} {
    %0 = tpu.iota {dimensions = array<i32: 1>} : vector<1x256xi32>
    %c16_i32 = arith.constant 16 : i32
    %c0_i32 = arith.constant 0 : i32
    %1 = arith.cmpi eq, %c16_i32, %c0_i32 : i32
    %c1_i32 = arith.constant 1 : i32
    %2 = arith.select %1, %c1_i32, %c16_i32 : i32
    %3 = vector.broadcast %2 : i32 to vector<1x256xi32>
    %4 = arith.remsi %0, %3 : vector<1x256xi32>
    %c0_i32_0 = arith.constant 0 : i32
    %5 = vector.broadcast %c0_i32_0 : i32 to vector<1x256xi32>
    %6 = arith.cmpi ne, %4, %5 : vector<1x256xi32>
    %c0_i32_1 = arith.constant 0 : i32
    %7 = vector.broadcast %c0_i32_1 : i32 to vector<1x256xi32>
    %8 = arith.cmpi slt, %4, %7 : vector<1x256xi32>
    %c0_i32_2 = arith.constant 0 : i32
    %9 = arith.cmpi slt, %2, %c0_i32_2 : i32
    %10 = vector.broadcast %9 : i1 to vector<1x256xi1>
    %11 = vector.broadcast %10 : vector<1x256xi1> to vector<1x256xi1>
    %12 = arith.xori %8, %11 : vector<1x256xi1>
    %13 = arith.andi %12, %6 : vector<1x256xi1>
    %14 = vector.broadcast %2 : i32 to vector<1x256xi32>
    %15 = arith.addi %4, %14 : vector<1x256xi32>
    %16 = arith.select %13, %15, %4 : vector<1x256xi1>, vector<1x256xi32>
    %c0_i32_3 = arith.constant 0 : i32
    %17 = vector.broadcast %c0_i32_3 : i32 to vector<1x256xi32>
    %18 = arith.cmpi sgt, %16, %17 : vector<1x256xi32>
    %c15_i32 = arith.constant 15 : i32
    %19 = vector.broadcast %c15_i32 : i32 to vector<1x256xi32>
    %20 = arith.cmpi slt, %16, %19 : vector<1x256xi32>
    %c0 = arith.constant 0 : index
    %c0_4 = arith.constant 0 : index
    %c0_5 = arith.constant 0 : index
    %21 = vector.load %arg1[%c0, %c0_4, %c0_5] : memref<1x8x256xf32, #tpu.memory_space<vmem>>, vector<1x8x256xf32>
    %22 = vector.shape_cast %21 : vector<1x8x256xf32> to vector<8x256xf32>
    %cst = arith.constant 0.000000e+00 : f32
    %23 = vector.broadcast %cst : f32 to vector<8x290xf32>
    %c0_6 = arith.constant 0 : index
    %c0_7 = arith.constant 0 : index
    %24 = vector.load %arg9[%c0_6, %c0_7] : memref<8x290xf32, #tpu.memory_space<vmem>>, vector<8x290xf32>
    tpu.vector_store %arg9[%c0_6, %c0_7], %23 {strides = array<i32>} : memref<8x290xf32, #tpu.memory_space<vmem>>, vector<8x290xf32>,
    %c0_8 = arith.constant 0 : index
    %c17 = arith.constant 17 : index
    %25 = vector.load %arg9[%c0_8, %c17] : memref<8x290xf32, #tpu.memory_space<vmem>>, vector<8x256xf32>
    tpu.vector_store %arg9[%c0_8, %c17], %22 {strides = array<i32>} : memref<8x290xf32, #tpu.memory_space<vmem>>, vector<8x256xf32>,
    %c0_9 = arith.constant 0 : index
    %c0_10 = arith.constant 0 : index
    %26 = vector.load %arg9[%c0_9, %c0_10] : memref<8x290xf32, #tpu.memory_space<vmem>>, vector<8x256xf32>
    %c0_i32_11 = arith.constant 0 : i32
    %27 = arith.sitofp %c0_i32_11 : i32 to f32
    %28 = vector.shape_cast %18 : vector<1x256xi1> to vector<1x256xi1>
    %29 = vector.broadcast %28 : vector<1x256xi1> to vector<8x256xi1>
    %30 = vector.broadcast %27 : f32 to vector<8x256xf32>
    %31 = arith.select %29, %26, %30 : vector<8x256xi1>, vector<8x256xf32>
    %c0_12 = arith.constant 0 : index
    %c0_13 = arith.constant 0 : index
    %32 = vector.load %arg10[%c0_12, %c0_13] : memref<72x256xf32, #tpu.memory_space<vmem>>, vector<8x256xf32>
    tpu.vector_store %arg10[%c0_12, %c0_13], %31 {strides = array<i32>} : memref<72x256xf32, #tpu.memory_space<vmem>>, vector<8x256xf32>,
    %c0_14 = arith.constant 0 : index
    %c1 = arith.constant 1 : index
    %33 = vector.load %arg9[%c0_14, %c1] : memref<8x290xf32, #tpu.memory_space<vmem>>, vector<8x256xf32>
    %c8 = arith.constant 8 : index
    %c0_15 = arith.constant 0 : index
    %34 = vector.load %arg10[%c8, %c0_15] : memref<72x256xf32, #tpu.memory_space<vmem>>, vector<8x256xf32>
    tpu.vector_store %arg10[%c8, %c0_15], %33 {strides = array<i32>} : memref<72x256xf32, #tpu.memory_space<vmem>>, vector<8x256xf32>,
    %c0_16 = arith.constant 0 : index
    %c2 = arith.constant 2 : index
    %35 = vector.load %arg9[%c0_16, %c2] : memref<8x290xf32, #tpu.memory_space<vmem>>, vector<8x256xf32>
    %c0_i32_17 = arith.constant 0 : i32
    %36 = arith.sitofp %c0_i32_17 : i32 to f32
    %37 = vector.shape_cast %20 : vector<1x256xi1> to vector<1x256xi1>
    %38 = vector.broadcast %37 : vector<1x256xi1> to vector<8x256xi1>
    %39 = vector.broadcast %36 : f32 to vector<8x256xf32>
    %40 = arith.select %38, %35, %39 : vector<8x256xi1>, vector<8x256xf32>
    %c16 = arith.constant 16 : index
    %c0_18 = arith.constant 0 : index
    %41 = vector.load %arg10[%c16, %c0_18] : memref<72x256xf32, #tpu.memory_space<vmem>>, vector<8x256xf32>
    tpu.vector_store %arg10[%c16, %c0_18], %40 {strides = array<i32>} : memref<72x256xf32, #tpu.memory_space<vmem>>, vector<8x256xf32>,
    %c0_19 = arith.constant 0 : index
    %c16_20 = arith.constant 16 : index
    %42 = vector.load %arg9[%c0_19, %c16_20] : memref<8x290xf32, #tpu.memory_space<vmem>>, vector<8x256xf32>
    %c0_i32_21 = arith.constant 0 : i32
    %43 = arith.sitofp %c0_i32_21 : i32 to f32
    %44 = vector.shape_cast %18 : vector<1x256xi1> to vector<1x256xi1>
    %45 = vector.broadcast %44 : vector<1x256xi1> to vector<8x256xi1>
    %46 = vector.broadcast %43 : f32 to vector<8x256xf32>
    %47 = arith.select %45, %42, %46 : vector<8x256xi1>, vector<8x256xf32>
    %c24 = arith.constant 24 : index
    %c0_22 = arith.constant 0 : index
    %48 = vector.load %arg10[%c24, %c0_22] : memref<72x256xf32, #tpu.memory_space<vmem>>, vector<8x256xf32>
    tpu.vector_store %arg10[%c24, %c0_22], %47 {strides = array<i32>} : memref<72x256xf32, #tpu.memory_space<vmem>>, vector<8x256xf32>,
    %c0_23 = arith.constant 0 : index
    %c17_24 = arith.constant 17 : index
    %49 = vector.load %arg9[%c0_23, %c17_24] : memref<8x290xf32, #tpu.memory_space<vmem>>, vector<8x256xf32>
    %c32 = arith.constant 32 : index
    %c0_25 = arith.constant 0 : index
    %50 = vector.load %arg10[%c32, %c0_25] : memref<72x256xf32, #tpu.memory_space<vmem>>, vector<8x256xf32>
    tpu.vector_store %arg10[%c32, %c0_25], %49 {strides = array<i32>} : memref<72x256xf32, #tpu.memory_space<vmem>>, vector<8x256xf32>,
    %c0_26 = arith.constant 0 : index
    %c18 = arith.constant 18 : index
    %51 = vector.load %arg9[%c0_26, %c18] : memref<8x290xf32, #tpu.memory_space<vmem>>, vector<8x256xf32>
    %c0_i32_27 = arith.constant 0 : i32
    %52 = arith.sitofp %c0_i32_27 : i32 to f32
    %53 = vector.shape_cast %20 : vector<1x256xi1> to vector<1x256xi1>
    %54 = vector.broadcast %53 : vector<1x256xi1> to vector<8x256xi1>
    %55 = vector.broadcast %52 : f32 to vector<8x256xf32>
    %56 = arith.select %54, %51, %55 : vector<8x256xi1>, vector<8x256xf32>
    %c40 = arith.constant 40 : index
    %c0_28 = arith.constant 0 : index
    %57 = vector.load %arg10[%c40, %c0_28] : memref<72x256xf32, #tpu.memory_space<vmem>>, vector<8x256xf32>
    tpu.vector_store %arg10[%c40, %c0_28], %56 {strides = array<i32>} : memref<72x256xf32, #tpu.memory_space<vmem>>, vector<8x256xf32>,
    %c0_29 = arith.constant 0 : index
    %c32_30 = arith.constant 32 : index
    %58 = vector.load %arg9[%c0_29, %c32_30] : memref<8x290xf32, #tpu.memory_space<vmem>>, vector<8x256xf32>
    %c0_i32_31 = arith.constant 0 : i32
    %59 = arith.sitofp %c0_i32_31 : i32 to f32
    %60 = vector.shape_cast %18 : vector<1x256xi1> to vector<1x256xi1>
    %61 = vector.broadcast %60 : vector<1x256xi1> to vector<8x256xi1>
    %62 = vector.broadcast %59 : f32 to vector<8x256xf32>
    %63 = arith.select %61, %58, %62 : vector<8x256xi1>, vector<8x256xf32>
    %c48 = arith.constant 48 : index
    %c0_32 = arith.constant 0 : index
    %64 = vector.load %arg10[%c48, %c0_32] : memref<72x256xf32, #tpu.memory_space<vmem>>, vector<8x256xf32>
    tpu.vector_store %arg10[%c48, %c0_32], %63 {strides = array<i32>} : memref<72x256xf32, #tpu.memory_space<vmem>>, vector<8x256xf32>,
    %c0_33 = arith.constant 0 : index
    %c33 = arith.constant 33 : index
    %65 = vector.load %arg9[%c0_33, %c33] : memref<8x290xf32, #tpu.memory_space<vmem>>, vector<8x256xf32>
    %c56 = arith.constant 56 : index
    %c0_34 = arith.constant 0 : index
    %66 = vector.load %arg10[%c56, %c0_34] : memref<72x256xf32, #tpu.memory_space<vmem>>, vector<8x256xf32>
    tpu.vector_store %arg10[%c56, %c0_34], %65 {strides = array<i32>} : memref<72x256xf32, #tpu.memory_space<vmem>>, vector<8x256xf32>,
    %c0_35 = arith.constant 0 : index
    %c34 = arith.constant 34 : index
    %67 = vector.load %arg9[%c0_35, %c34] : memref<8x290xf32, #tpu.memory_space<vmem>>, vector<8x256xf32>
    %c0_i32_36 = arith.constant 0 : i32
    %68 = arith.sitofp %c0_i32_36 : i32 to f32
    %69 = vector.shape_cast %20 : vector<1x256xi1> to vector<1x256xi1>
    %70 = vector.broadcast %69 : vector<1x256xi1> to vector<8x256xi1>
    %71 = vector.broadcast %68 : f32 to vector<8x256xf32>
    %72 = arith.select %70, %67, %71 : vector<8x256xi1>, vector<8x256xf32>
    %c64 = arith.constant 64 : index
    %c0_37 = arith.constant 0 : index
    %73 = vector.load %arg10[%c64, %c0_37] : memref<72x256xf32, #tpu.memory_space<vmem>>, vector<8x256xf32>
    tpu.vector_store %arg10[%c64, %c0_37], %72 {strides = array<i32>} : memref<72x256xf32, #tpu.memory_space<vmem>>, vector<8x256xf32>,
    %c0_38 = arith.constant 0 : index
    %c0_39 = arith.constant 0 : index
    %74 = vector.load %arg2[%c0_38, %c0_39] : memref<8x72xf32, #tpu.memory_space<vmem>>, vector<8x72xf32>
    %c0_40 = arith.constant 0 : index
    %c0_41 = arith.constant 0 : index
    %75 = vector.load %arg10[%c0_40, %c0_41] : memref<72x256xf32, #tpu.memory_space<vmem>>, vector<72x256xf32>
    %cst_42 = arith.constant dense<0.000000e+00> : vector<8x256xf32>
    %76 = tpu.matmul %74, %75, %cst_42 {dimension_numbers = #tpu.dot_dimension_numbers<[1], [0], [0], [1], [0, 0, 1, 1], [], []>} : vector<8x72xf32>, vector<72x256xf32>, vector<8x256xf32> -> vector<8x256xf32>
    %c0_43 = arith.constant 0 : index
    %c0_44 = arith.constant 0 : index
    %77 = vector.load %arg3[%c0_43, %c0_44] : memref<8x1xf32, #tpu.memory_space<vmem>>, vector<8x1xf32>
    %78 = vector.broadcast %77 : vector<8x1xf32> to vector<8x256xf32>
    %79 = arith.mulf %76, %78 : vector<8x256xf32>
    %c0_45 = arith.constant 0 : index
    %c0_46 = arith.constant 0 : index
    %80 = vector.load %arg4[%c0_45, %c0_46] : memref<8x1xf32, #tpu.memory_space<vmem>>, vector<8x1xf32>
    %81 = vector.broadcast %80 : vector<8x1xf32> to vector<8x256xf32>
    %82 = arith.addf %79, %81 : vector<8x256xf32>
    %cst_47 = arith.constant 0.000000e+00 : f32
    %83 = vector.broadcast %cst_47 : f32 to vector<8x256xf32>
    %84 = arith.maximumf %82, %83 : vector<8x256xf32>
    %cst_48 = arith.constant 0.000000e+00 : f32
    %85 = vector.broadcast %cst_48 : f32 to vector<8x290xf32>
    %c0_49 = arith.constant 0 : index
    %c0_50 = arith.constant 0 : index
    %86 = vector.load %arg11[%c0_49, %c0_50] : memref<8x290xf32, #tpu.memory_space<vmem>>, vector<8x290xf32>
    tpu.vector_store %arg11[%c0_49, %c0_50], %85 {strides = array<i32>} : memref<8x290xf32, #tpu.memory_space<vmem>>, vector<8x290xf32>,
    %c0_51 = arith.constant 0 : index
    %c17_52 = arith.constant 17 : index
    %87 = vector.load %arg11[%c0_51, %c17_52] : memref<8x290xf32, #tpu.memory_space<vmem>>, vector<8x256xf32>
    tpu.vector_store %arg11[%c0_51, %c17_52], %84 {strides = array<i32>} : memref<8x290xf32, #tpu.memory_space<vmem>>, vector<8x256xf32>,
    %c0_53 = arith.constant 0 : index
    %c0_54 = arith.constant 0 : index
    %88 = vector.load %arg11[%c0_53, %c0_54] : memref<8x290xf32, #tpu.memory_space<vmem>>, vector<8x256xf32>
    %c0_i32_55 = arith.constant 0 : i32
    %89 = arith.sitofp %c0_i32_55 : i32 to f32
    %90 = vector.shape_cast %18 : vector<1x256xi1> to vector<1x256xi1>
    %91 = vector.broadcast %90 : vector<1x256xi1> to vector<8x256xi1>
    %92 = vector.broadcast %89 : f32 to vector<8x256xf32>
    %93 = arith.select %91, %88, %92 : vector<8x256xi1>, vector<8x256xf32>
    %c0_56 = arith.constant 0 : index
    %c0_57 = arith.constant 0 : index
    %94 = vector.load %arg12[%c0_56, %c0_57] : memref<72x256xf32, #tpu.memory_space<vmem>>, vector<8x256xf32>
    tpu.vector_store %arg12[%c0_56, %c0_57], %93 {strides = array<i32>} : memref<72x256xf32, #tpu.memory_space<vmem>>, vector<8x256xf32>,
    %c0_58 = arith.constant 0 : index
    %c1_59 = arith.constant 1 : index
    %95 = vector.load %arg11[%c0_58, %c1_59] : memref<8x290xf32, #tpu.memory_space<vmem>>, vector<8x256xf32>
    %c8_60 = arith.constant 8 : index
    %c0_61 = arith.constant 0 : index
    %96 = vector.load %arg12[%c8_60, %c0_61] : memref<72x256xf32, #tpu.memory_space<vmem>>, vector<8x256xf32>
    tpu.vector_store %arg12[%c8_60, %c0_61], %95 {strides = array<i32>} : memref<72x256xf32, #tpu.memory_space<vmem>>, vector<8x256xf32>,
    %c0_62 = arith.constant 0 : index
    %c2_63 = arith.constant 2 : index
    %97 = vector.load %arg11[%c0_62, %c2_63] : memref<8x290xf32, #tpu.memory_space<vmem>>, vector<8x256xf32>
    %c0_i32_64 = arith.constant 0 : i32
    %98 = arith.sitofp %c0_i32_64 : i32 to f32
    %99 = vector.shape_cast %20 : vector<1x256xi1> to vector<1x256xi1>
    %100 = vector.broadcast %99 : vector<1x256xi1> to vector<8x256xi1>
    %101 = vector.broadcast %98 : f32 to vector<8x256xf32>
    %102 = arith.select %100, %97, %101 : vector<8x256xi1>, vector<8x256xf32>
    %c16_65 = arith.constant 16 : index
    %c0_66 = arith.constant 0 : index
    %103 = vector.load %arg12[%c16_65, %c0_66] : memref<72x256xf32, #tpu.memory_space<vmem>>, vector<8x256xf32>
    tpu.vector_store %arg12[%c16_65, %c0_66], %102 {strides = array<i32>} : memref<72x256xf32, #tpu.memory_space<vmem>>, vector<8x256xf32>,
    %c0_67 = arith.constant 0 : index
    %c16_68 = arith.constant 16 : index
    %104 = vector.load %arg11[%c0_67, %c16_68] : memref<8x290xf32, #tpu.memory_space<vmem>>, vector<8x256xf32>
    %c0_i32_69 = arith.constant 0 : i32
    %105 = arith.sitofp %c0_i32_69 : i32 to f32
    %106 = vector.shape_cast %18 : vector<1x256xi1> to vector<1x256xi1>
    %107 = vector.broadcast %106 : vector<1x256xi1> to vector<8x256xi1>
    %108 = vector.broadcast %105 : f32 to vector<8x256xf32>
    %109 = arith.select %107, %104, %108 : vector<8x256xi1>, vector<8x256xf32>
    %c24_70 = arith.constant 24 : index
    %c0_71 = arith.constant 0 : index
    %110 = vector.load %arg12[%c24_70, %c0_71] : memref<72x256xf32, #tpu.memory_space<vmem>>, vector<8x256xf32>
    tpu.vector_store %arg12[%c24_70, %c0_71], %109 {strides = array<i32>} : memref<72x256xf32, #tpu.memory_space<vmem>>, vector<8x256xf32>,
    %c0_72 = arith.constant 0 : index
    %c17_73 = arith.constant 17 : index
    %111 = vector.load %arg11[%c0_72, %c17_73] : memref<8x290xf32, #tpu.memory_space<vmem>>, vector<8x256xf32>
    %c32_74 = arith.constant 32 : index
    %c0_75 = arith.constant 0 : index
    %112 = vector.load %arg12[%c32_74, %c0_75] : memref<72x256xf32, #tpu.memory_space<vmem>>, vector<8x256xf32>
    tpu.vector_store %arg12[%c32_74, %c0_75], %111 {strides = array<i32>} : memref<72x256xf32, #tpu.memory_space<vmem>>, vector<8x256xf32>,
    %c0_76 = arith.constant 0 : index
    %c18_77 = arith.constant 18 : index
    %113 = vector.load %arg11[%c0_76, %c18_77] : memref<8x290xf32, #tpu.memory_space<vmem>>, vector<8x256xf32>
    %c0_i32_78 = arith.constant 0 : i32
    %114 = arith.sitofp %c0_i32_78 : i32 to f32
    %115 = vector.shape_cast %20 : vector<1x256xi1> to vector<1x256xi1>
    %116 = vector.broadcast %115 : vector<1x256xi1> to vector<8x256xi1>
    %117 = vector.broadcast %114 : f32 to vector<8x256xf32>
    %118 = arith.select %116, %113, %117 : vector<8x256xi1>, vector<8x256xf32>
    %c40_79 = arith.constant 40 : index
    %c0_80 = arith.constant 0 : index
    %119 = vector.load %arg12[%c40_79, %c0_80] : memref<72x256xf32, #tpu.memory_space<vmem>>, vector<8x256xf32>
    tpu.vector_store %arg12[%c40_79, %c0_80], %118 {strides = array<i32>} : memref<72x256xf32, #tpu.memory_space<vmem>>, vector<8x256xf32>,
    %c0_81 = arith.constant 0 : index
    %c32_82 = arith.constant 32 : index
    %120 = vector.load %arg11[%c0_81, %c32_82] : memref<8x290xf32, #tpu.memory_space<vmem>>, vector<8x256xf32>
    %c0_i32_83 = arith.constant 0 : i32
    %121 = arith.sitofp %c0_i32_83 : i32 to f32
    %122 = vector.shape_cast %18 : vector<1x256xi1> to vector<1x256xi1>
    %123 = vector.broadcast %122 : vector<1x256xi1> to vector<8x256xi1>
    %124 = vector.broadcast %121 : f32 to vector<8x256xf32>
    %125 = arith.select %123, %120, %124 : vector<8x256xi1>, vector<8x256xf32>
    %c48_84 = arith.constant 48 : index
    %c0_85 = arith.constant 0 : index
    %126 = vector.load %arg12[%c48_84, %c0_85] : memref<72x256xf32, #tpu.memory_space<vmem>>, vector<8x256xf32>
    tpu.vector_store %arg12[%c48_84, %c0_85], %125 {strides = array<i32>} : memref<72x256xf32, #tpu.memory_space<vmem>>, vector<8x256xf32>,
    %c0_86 = arith.constant 0 : index
    %c33_87 = arith.constant 33 : index
    %127 = vector.load %arg11[%c0_86, %c33_87] : memref<8x290xf32, #tpu.memory_space<vmem>>, vector<8x256xf32>
    %c56_88 = arith.constant 56 : index
    %c0_89 = arith.constant 0 : index
    %128 = vector.load %arg12[%c56_88, %c0_89] : memref<72x256xf32, #tpu.memory_space<vmem>>, vector<8x256xf32>
    tpu.vector_store %arg12[%c56_88, %c0_89], %127 {strides = array<i32>} : memref<72x256xf32, #tpu.memory_space<vmem>>, vector<8x256xf32>,
    %c0_90 = arith.constant 0 : index
    %c34_91 = arith.constant 34 : index
    %129 = vector.load %arg11[%c0_90, %c34_91] : memref<8x290xf32, #tpu.memory_space<vmem>>, vector<8x256xf32>
    %c0_i32_92 = arith.constant 0 : i32
    %130 = arith.sitofp %c0_i32_92 : i32 to f32
    %131 = vector.shape_cast %20 : vector<1x256xi1> to vector<1x256xi1>
    %132 = vector.broadcast %131 : vector<1x256xi1> to vector<8x256xi1>
    %133 = vector.broadcast %130 : f32 to vector<8x256xf32>
    %134 = arith.select %132, %129, %133 : vector<8x256xi1>, vector<8x256xf32>
    %c64_93 = arith.constant 64 : index
    %c0_94 = arith.constant 0 : index
    %135 = vector.load %arg12[%c64_93, %c0_94] : memref<72x256xf32, #tpu.memory_space<vmem>>, vector<8x256xf32>
    tpu.vector_store %arg12[%c64_93, %c0_94], %134 {strides = array<i32>} : memref<72x256xf32, #tpu.memory_space<vmem>>, vector<8x256xf32>,
    %c0_95 = arith.constant 0 : index
    %c0_96 = arith.constant 0 : index
    %136 = vector.load %arg5[%c0_95, %c0_96] : memref<8x72xf32, #tpu.memory_space<vmem>>, vector<8x72xf32>
    %c0_97 = arith.constant 0 : index
    %c0_98 = arith.constant 0 : index
    %137 = vector.load %arg12[%c0_97, %c0_98] : memref<72x256xf32, #tpu.memory_space<vmem>>, vector<72x256xf32>
    %cst_99 = arith.constant dense<0.000000e+00> : vector<8x256xf32>
    %138 = tpu.matmul %136, %137, %cst_99 {dimension_numbers = #tpu.dot_dimension_numbers<[1], [0], [0], [1], [0, 0, 1, 1], [], []>} : vector<8x72xf32>, vector<72x256xf32>, vector<8x256xf32> -> vector<8x256xf32>
    %c0_100 = arith.constant 0 : index
    %c0_101 = arith.constant 0 : index
    %139 = vector.load %arg6[%c0_100, %c0_101] : memref<8x1xf32, #tpu.memory_space<vmem>>, vector<8x1xf32>
    %140 = vector.broadcast %139 : vector<8x1xf32> to vector<8x256xf32>
    %141 = arith.mulf %138, %140 : vector<8x256xf32>
    %c0_102 = arith.constant 0 : index
    %c0_103 = arith.constant 0 : index
    %142 = vector.load %arg7[%c0_102, %c0_103] : memref<8x1xf32, #tpu.memory_space<vmem>>, vector<8x1xf32>
    %143 = vector.broadcast %142 : vector<8x1xf32> to vector<8x256xf32>
    %144 = arith.addf %141, %143 : vector<8x256xf32>
    %145 = arith.addf %144, %22 : vector<8x256xf32>
    %cst_104 = arith.constant 0.000000e+00 : f32
    %146 = vector.broadcast %cst_104 : f32 to vector<8x256xf32>
    %147 = arith.maximumf %145, %146 : vector<8x256xf32>
    %148 = vector.shape_cast %147 : vector<8x256xf32> to vector<1x8x256xf32>
    %c0_105 = arith.constant 0 : index
    %c0_106 = arith.constant 0 : index
    %c0_107 = arith.constant 0 : index
    %149 = vector.load %arg8[%c0_105, %c0_106, %c0_107] : memref<1x8x256xf32, #tpu.memory_space<vmem>>, vector<1x8x256xf32>
    tpu.vector_store %arg8[%c0_105, %c0_106, %c0_107], %148 {strides = array<i32>} : memref<1x8x256xf32, #tpu.memory_space<vmem>>, vector<1x8x256xf32>,
    return
  }
  func.func @transform_0(%arg0: i32) -> (i32, i32, i32) {
    %c0_i32 = arith.constant 0 : i32
    %c0_i32_0 = arith.constant 0 : i32
    %c0_i32_1 = arith.constant 0 : i32
    return %arg0, %c0_i32, %c0_i32_0 : i32, i32, i32
  }
  func.func @transform_1(%arg0: i32) -> (i32, i32) {
    %c0_i32 = arith.constant 0 : i32
    %c0_i32_0 = arith.constant 0 : i32
    %c0_i32_1 = arith.constant 0 : i32
    return %c0_i32, %c0_i32_0 : i32, i32
  }
  func.func @transform_2(%arg0: i32) -> (i32, i32) {
    %c0_i32 = arith.constant 0 : i32
    %c0_i32_0 = arith.constant 0 : i32
    %c0_i32_1 = arith.constant 0 : i32
    return %c0_i32, %c0_i32_0 : i32, i32
  }
  func.func @transform_3(%arg0: i32) -> (i32, i32) {
    %c0_i32 = arith.constant 0 : i32
    %c0_i32_0 = arith.constant 0 : i32
    %c0_i32_1 = arith.constant 0 : i32
    return %c0_i32, %c0_i32_0 : i32, i32
  }
  func.func @transform_4(%arg0: i32) -> (i32, i32) {
    %c0_i32 = arith.constant 0 : i32
    %c0_i32_0 = arith.constant 0 : i32
    %c0_i32_1 = arith.constant 0 : i32
    return %c0_i32, %c0_i32_0 : i32, i32
  }
  func.func @transform_5(%arg0: i32) -> (i32, i32) {
    %c0_i32 = arith.constant 0 : i32
    %c0_i32_0 = arith.constant 0 : i32
    %c0_i32_1 = arith.constant 0 : i32
    return %c0_i32, %c0_i32_0 : i32, i32
  }
  func.func @transform_6(%arg0: i32) -> (i32, i32) {
    %c0_i32 = arith.constant 0 : i32
    %c0_i32_0 = arith.constant 0 : i32
    %c0_i32_1 = arith.constant 0 : i32
    return %c0_i32, %c0_i32_0 : i32, i32
  }
  func.func @transform_7(%arg0: i32) -> (i32, i32, i32) {
    %c0_i32 = arith.constant 0 : i32
    %c0_i32_0 = arith.constant 0 : i32
    %c0_i32_1 = arith.constant 0 : i32
    return %arg0, %c0_i32, %c0_i32_0 : i32, i32, i32
  }
}

</mosaic_0001>

<bundles_post_ra>
// kernel: tpu_custom_call.1
= control target key start
LH: loop header
LB: loop body
LE: loop exit
PB: predicated region body
PF: predicated region fallthrough
CT: control target
= control target key end

     0   :  { %12 = vsyncpa [#allocation7], 0  ;;  %s1740_s0 = inlined_call_operand.vmem [shape: f32[2,8,256], index: 0, kind: input, shape index: {}]   ;;  %s1741_s1 = inlined_call_operand.hbm [shape: f32[8,72], index: 1, kind: input, shape index: {}]   ;;  %s1742_s2 = inlined_call_operand.vmem [shape: f32[8,1], index: 2, kind: input, shape index: {}]   ;;  %s1743_s3 = inlined_call_operand.vmem [shape: f32[8,1], index: 3, kind: input, shape index: {}]   ;;  %s1744_s4 = inlined_call_operand.vmem [shape: f32[8,72], index: 4, kind: input, shape index: {}]   ;;  %s1745_s5 = inlined_call_operand.vmem [shape: f32[8,1], index: 5, kind: input, shape index: {}]   ;;  %s1746_s6 = inlined_call_operand.vmem [shape: f32[8,1], index: 6, kind: input, shape index: {}]   ;;  %s1747_s7 = inlined_call_operand.hbm [shape: f32[2,8,256], index: 7, kind: output, shape index: {}]  }
   0x1   :  { %13 = vsyncpa [#allocation8], 0 }
   0x2   :  { %15 = vsyncpa [#allocation8 + $0x1], 0  ;;  %s1381_s24 = smov 0   ;;  %s1383_s25 = smov 0  }
   0x3   :  { %s1385_s26 = smov 0   ;;  %s1387_s27 = smov 0  }
   0x4 LB: > { %s1402_s28 = sadd.s32 4294967295, %s1325_s27   ;;  %s1007_s29 = sadd.s32 4294967294, %s1325_s27   ;;  %s1325_s27 = sphi %s1387_s27, %s1797_s27   ;;  %s1321_s26 = sphi %s1385_s26, %s1796_s26   ;;  %s1317_s25 = sphi %s1383_s25, %s1795_s25   ;;  %s1313_s24 = sphi %s1381_s24, %s1794_s24  }
   0x5   : > { %s1406_s30 = sadd.s32 1, %s1325_s27   ;;  %s180_s8 = sadd.s32 1, %s1321_s26 }
   0x6   : > { %s177_s9 = ssub.s32 %s1325_s27, %s1406_s30  ;;  %p190_p0 = scmp.ne.s32.totalorder %s1321_s26, %s1317_s25 }
   0x7   : > { %p178_p1 = scmp.eq.s32.totalorder %s177_s9, 0  ;;  %p191_p2 = scmp.eq.s32.totalorder %s1402_s28, 1 }
   0x8   : > { %p196_p3 = scmp.ne.s32.totalorder %s1317_s25, %s1313_s24  ;;  %p197_p4 = scmp.eq.s32.totalorder %s1007_s29, 1 }
   0x9   : > { %s1417_s10 = scalar_select %p178_p1, %s1321_s26, %s180_s8  }
   0xa   : > { %p1419_p5 = por %p191_p2, %p190_p0  ;;  %p1423_p6 = por %p197_p4, %p196_p3 }
   0xb   : > { %p1008_p7 = scmp.ge.s32.totalorder %s1325_s27, 1  ;;  %p204_p8 = scmp.lt.s32.totalorder %s1325_s27, 3 }
   0xc   : > { %s1758_s11 = scalar_select %p1419_p5, 1, 0 }
   0xd   : > { %s1759_s12 = scalar_select %p1423_p6, 1, 0 }
   0xe   : > { %p1748_p9 = scmp.eq.s32.totalorder %s1402_s28, 0  ;;  %p1430_p10 = pnand %p1008_p7, %p204_p8 }
   0xf   : > { %s1327_s14 = smov [#allocation6]   ;;  %s1231_s19 = scalar_lea.hbm %s1741_s1, 128 }
  0x10   : > { %s1760_s13 = scalar_select %p1430_p10, 1, 0 }
  0x11   : > { %s217_s15 = sshll.u32 %s1327_s14, 4  ;;  %p1103_p11 = pneg %p1430_p10  ;;  %s218_s15 = int_to_ptr.vmem [resolvable:$true] %s217_s15 }
  0x12   : > { %p1232_p13 = scmp.ne.s32.totalorder %s1741_s1, %s1231_s19  ;;  %p1238_p3 = scmp.lt.u32.totalorder %s1231_s19, %s1741_s1 }
  0x13   : > { %p1438_p12 = pnand %p1748_p9, %p1103_p11 }
  0x15   : > { %p1233_p0 = pneg %p1438_p12 }
  0x17   : > { %p1234_p1 = pnand %p1233_p0, %p1232_p13 }
  0x19   : > { %p1235_p2 = pneg %p1234_p1 }
  0x1b   : > { %p1240_p4 = pnand %p1238_p3, %p1235_p2 }
  0x1d   : > { %1243 = shalt.err (!%p1240_p4)
}
  0x1e   : > { %s1244_s29 = scalar_lea.vmem %s218_s15, 128  ;;  %p1252_p9 = scmp.lt.s32.totalorder %s218_s15, %s218_s15 }
  0x1f   : > { %p1245_p7 = scmp.ne.s32.totalorder %s218_s15, %s1244_s29  ;;  %p1253_p6 = scmp.lt.s32.totalorder %s1244_s29, %s1244_s29 }
  0x21   : > { %p1247_p8 = pnand %p1245_p7, %p1233_p0  ;;  %p1254_p5 = por %p1253_p6, %p1252_p9 }
  0x23   : > { %p1248_p11 = pneg %p1247_p8 }
  0x25   : > { %p1255_p10 = pnand %p1254_p5, %p1248_p11 }
  0x27   : > { %1258 = shalt.err (!%p1255_p10)
}
  0x28   : > { %1106 = dma.hbm_to_vmem [thread:$0]  (!%p1438_p12), %s1741_s1, 128, %s218_s15, [#allocation7]  }
  0x29   : > { %p1762_p13 = scmp.ne.s32.totalorder %s1760_s13, 0 }
  0x2a   : > { %p1763_p1 = scmp.eq.s32.totalorder (!%p1762_p13), %s1402_s28, 0 }
  0x2b   : > { %253 = sbr.rel (%p1762_p13) target bundleno = 1058 (0x422), region = 48 }
  0x32   : > { %1304 = dma.done.wait (%p1763_p1), [#allocation7], 128   ;;  %p1764_p0 = pmov %p1763_p1 }
  0x33   : > { %p285_p6 = scmp.lt.s32.totalorder %s1402_s28, 1  ;;  %v1328_v0 = vmov 0.0   ;;  %vm325_vm0 = vcmask 277504   ;;  %s1329_s18 = smov 17   ;;  %vm338_vm1 = vcmask 1047688   ;;  %vm333_vm2 = vcmask 138240  }
  0x34   : > { %1306 = vsyncadd (%p1764_p0), [#allocation7], 4294967168  ;;  %323 = vst [vmem:[#allocation2] sm:$0xff] %v1328_v0  ;;  %605 = vmatprep.mubr.f32.mxu0 %v1328_v0  ;;  %892 = vmatprep.mubr.f32.mxu1 %v1328_v0  ;;  %s1330_s19 = smov 126   ;;  %s1331_s20 = smov 127   ;;  %v1338_v9 = vmov 0   ;;  %v290_v12 = vlaneseq }
  0x35   : > { %630 = vst [vmem:[#allocation4] sm:$0xff] %v1328_v0  ;;  %s286_s14 = scalar_select %p285_p6, %s1402_s28, 1  ;;  %326 = vst.msk [vmem:[#allocation2 + $0x10] sm:$0xff] %vm325_vm0, %v1328_v0  ;;  %1194 = vset.pattern.permute.xlu1 %v1338_v9  ;;  %1195 = vset.pattern.permute.xlu0 %v1338_v9  ;;  %v620_v10 = vld [vmem:[%s1743_s3] sm:$0xff]  ;;  %vm364_vm4 = vcmask 1039360   ;;  %vm1754_vm6 = vcmask 1031168  }
  0x36   : > { %632 = vst.msk [vmem:[#allocation4 + $0x10] sm:$0xff] %vm325_vm0, %v1328_v0  ;;  %s1332_s21 = smov 111   ;;  %s1333_s22 = smov 112   ;;  %v612_v11 = vld [vmem:[%s1742_s2] sm:$0xff]  ;;  %v291_v15 = vand.u32 127, %v290_v12  ;;  %vm1339_vm7 = vmmov 1  }
  0x37   : > { %s1023_s13 = sshll.u32 %s286_s14, 4  ;;  %s1334_s23 = smov 96   ;;  %vm408_vm9 = vcmask 916480   ;;  %vm1751_vm13 = vcmask 908288   ;;  %vm1753_vm15 = vcmask 900096  }
  0x38   : > { %s289_s17 = scalar_lea.vmem %s1740_s0, %s1023_s13  ;;  %s1335_s29 = smov 110   ;;  %v292_v18 = vadd.s32 128, %v291_v15  ;;  %v297_v22 = vand.u32 15, %v291_v15 }
  0x39   : > { %v1469_v1 = vld [vmem:[%s289_s17] sm:$0xff]  ;;  %v1473_v2 = vld [vmem:[%s289_s17 + $0x8] sm:$0xff]  ;;  %s1336_s8 = smov 94   ;;  %s1337_s9 = smov 95  }
  0x3a   : > { %329 = vrot.lane.b32.xlu0 %v1469_v1, %s1329_s18  ;;  %v304_v21 = vand.u32 15, %v292_v18  ;;  %vm1523_vm5 = vcmp.gt.s32.totalorder %v297_v22, 0  ;;  %vm1549_vm12 = vcmp.lt.s32.totalorder %v297_v22, 15  ;;  %p1792_p9 = scmp.ne.s32.totalorder %s1758_s11, 0 }
  0x3b   : > { %vm1541_vm10 = vmpackc.low %vm1339_vm7, %vm1523_vm5 }
  0x3c   : > { %vm1519_vm3 = vcmp.gt.s32.totalorder %v304_v21, 0  ;;  %vm1545_vm11 = vcmp.lt.s32.totalorder %v304_v21, 15  ;;  %vm1755_vm0 = vmpackc.low %vm1523_vm5, %vm1549_vm12 }
  0x3d   : > { %vm1531_vm8 = vmpackc.low %vm1339_vm7, %vm1519_vm3 }
  0x3e   : > { %331 = vrot.lane.b32.xlu0 %v1473_v2, %s1329_s18  ;;  %vm1752_vm14 = vmpackc.low %vm1519_vm3, %vm1545_vm11 }
  0xac   : > { %v330_v3 = vpop.permute.xlu0 %329 }
  0xad   : > { %339 = vst.msk [vmem:[#allocation2] sm:$0xff] %vm338_vm1, %v330_v3 }
  0xb0   : > { %v332_v4 = vpop.permute.xlu0 %331 }
  0xb1   : > { %v1479_v5 = vsel %vm333_vm2, %v330_v3, %v332_v4  ;;  %341 = vst.msk [vmem:[#allocation2 + $0x10] sm:$0xff] %vm333_vm2, %v332_v4 }
  0xb4   : > { %v1482_v6 = vld [vmem:[#allocation2] sm:$0xff] }
  0xb5   : > { %381 = vrot.lane.b32.xlu0 %v1482_v6, %s1330_s19  ;;  %358 = vrot.lane.b32.xlu1 %v1482_v6, %s1331_s20 }
  0xb8   : > { %v373_v7 = vld [vmem:[#allocation2 + $0x10] sm:$0xff] }
  0xb9   : > { %423 = vrot.lane.b32.xlu0 %v1482_v6, %s1332_s21  ;;  %402 = vrot.lane.b32.xlu1 %v1482_v6, %s1333_s22  ;;  %v1164_v8 = vpack.i.bf16 %v373_v7, %v1479_v5 }
  0xbd   : > { %463 = vrot.lane.b32.xlu0 %v1482_v6, %s1334_s23  ;;  %442 = vrot.lane.b32.xlu1 %v1482_v6, %s1335_s29 }
  0xc1   : > { %1165 = vrot.lane.b32.xlu0 %v1164_v8, %s1330_s19  ;;  %1160 = vrot.lane.b32.xlu1 %v1164_v8, %s1331_s20 }
  0xc5   : > { %1175 = vrot.lane.b32.xlu0 %v1164_v8, %s1332_s21  ;;  %1170 = vrot.lane.b32.xlu1 %v1164_v8, %s1333_s22 }
  0xc9   : > { %1185 = vrot.lane.b32.xlu0 %v1164_v8, %s1334_s23  ;;  %1180 = vrot.lane.b32.xlu1 %v1164_v8, %s1335_s29 }
  0xcd   : > { %505 = vrot.lane.b32.xlu0 %v1479_v5, %s1336_s8  ;;  %1190 = vrot.lane.b32.xlu1 %v1164_v8, %s1337_s9 }
  0xd1   : > { %503 = vrot.lane.b32.xlu0 %v1482_v6, %s1336_s8  ;;  %484 = vrot.lane.b32.xlu1 %v1482_v6, %s1337_s9 }
  0xd5   : > { %507 = vrot.lane.b32.xlu1 %v373_v7, %s1336_s8  ;;  %623 = vperm.xlu0 %1195, %v620_v10  }
  0xd9   : > { %615 = vperm.xlu1 %1194, %v612_v11  }
 0x127   : > { %v359_v13 = vpop.permute.xlu1 %358  ;;  %v382_v14 = vpop.permute.xlu0 %381 }
 0x12b   : > { %v403_v16 = vpop.permute.xlu1 %402  ;;  %v424_v17 = vpop.permute.xlu0 %423 }
 0x12f   : > { %v443_v19 = vpop.permute.xlu1 %442  ;;  %v1517_v20 = vpop.permute.xlu0 %463 }
 0x133   : > { %v1161_v23 = vpop.permute.xlu1 %1160  ;;  %v1166_v24 = vpop.permute.xlu0 %1165 }
 0x134   : > { %v1163_v26 = vunpack.i.h.bf16 %v1161_v23  ;;  %v1162_v27 = vunpack.i.l.bf16 %v1161_v23  ;;  %v1168_v29 = vunpack.i.h.bf16 %v1166_v24  ;;  %v1167_v30 = vunpack.i.l.bf16 %v1166_v24 }
 0x136   : > { %v366_v31 = vsel %vm364_vm4, %v1162_v27, %v1163_v26  ;;  %v365_v33 = vsel %vm364_vm4, %v359_v13, %v1162_v27  ;;  %v388_v45 = vsel %vm1754_vm6, %v382_v14, %v1167_v30  ;;  %v389_v46 = vsel %vm1754_vm6, %v1167_v30, %v1168_v29 }
 0x137   : > { %v1171_v34 = vpop.permute.xlu1 %1170  ;;  %v1176_v35 = vpop.permute.xlu0 %1175  ;;  %v1049_v36 = vpack.c.bf16 %v366_v31, %v1479_v5  ;;  %v1052_v37 = vpack.c.bf16 %v365_v33, %v1482_v6  ;;  %vm490_vm6 = vcmask 777216  }
 0x138   : > { %v1173_v40 = vunpack.i.h.bf16 %v1171_v34  ;;  %v1172_v41 = vunpack.i.l.bf16 %v1171_v34  ;;  %v1178_v43 = vunpack.i.h.bf16 %v1176_v35  ;;  %v1177_v44 = vunpack.i.l.bf16 %v1176_v35 }
 0x139   : > { %1051 = vmatprep.subr.msk.bf16.mxu0 %vm1531_vm8, %v1049_v36 }
 0x13a   : > { %v409_v47 = vsel %vm408_vm9, %v403_v16, %v1172_v41  ;;  %v410_v48 = vsel %vm408_vm9, %v1172_v41, %v1173_v40  ;;  %1054 = vmatpush1.bf16.msk.msra.mxu0 %vm1541_vm10, %v1052_v37  ;;  %v430_v55 = vsel %vm1751_vm13, %v424_v17, %v1177_v44  ;;  %v431_v56 = vsel %vm1751_vm13, %v1177_v44, %v1178_v43  ;;  %vm1586_vm13 = vmpackc.low %vm1545_vm11, %vm1339_vm7  ;;  %v518_v17 = vld [vmem:[#allocation6] sm:$0xff]  ;;  %v899_v40 = vld [vmem:[%s1745_s5] sm:$0xff] }
 0x13b   : > { %v1055_v49 = vpack.c.bf16 %v410_v48, %v389_v46  ;;  %v1058_v50 = vpack.c.bf16 %v409_v47, %v388_v45  ;;  %v1181_v51 = vpop.permute.xlu1 %1180  ;;  %v1186_v52 = vpop.permute.xlu0 %1185  ;;  %v907_v41 = vld [vmem:[%s1746_s6] sm:$0xff] }
 0x13c   : > { %v1183_v53 = vunpack.i.h.bf16 %v1181_v51  ;;  %v1182_v54 = vunpack.i.l.bf16 %v1181_v51  ;;  %v1188_v59 = vunpack.i.h.bf16 %v1186_v52  ;;  %v1187_v60 = vunpack.i.l.bf16 %v1186_v52 }
 0x13d   : > { %1057 = vmatprep.subr.msk.bf16.mxu0 %vm1752_vm14, %v1055_v49  ;;  %vm469_vm14 = vcmask 785408  }
 0x13e   : > { %v449_v57 = vsel %vm1753_vm15, %v443_v19, %v1182_v54  ;;  %v450_v58 = vsel %vm1753_vm15, %v1182_v54, %v1183_v53  ;;  %1060 = vmatpush1.bf16.msk.msra.mxu0 %vm1755_vm0, %v1058_v50  ;;  %vm1593_vm15 = vmpackc.low %vm1549_vm12, %vm1339_vm7  ;;  %v471_v7 = vsel %vm469_vm14, %v1187_v60, %v1188_v59  ;;  %v470_v11 = vsel %vm469_vm14, %v1517_v20, %v1187_v60 }
 0x13f   : > { %v1061_v62 = vpack.c.bf16 %v450_v58, %v431_v56  ;;  %v1064_v63 = vpack.c.bf16 %v449_v57, %v430_v55  ;;  %v1191_v0 = vpop.permute.xlu1 %1190  ;;  %v506_v6 = vpop.permute.xlu0 %505  ;;  %vm1757_vm7 = vcmask 769024   ;;  %vm1756_vm0 = vcmask 588800  }
 0x140   : > { %v1193_v4 = vunpack.i.h.bf16 %v1191_v0  ;;  %v1192_v5 = vunpack.i.l.bf16 %v1191_v0 }
 0x141   : > { %1063 = vmatprep.subr.msk.bf16.mxu0 %vm1586_vm13, %v1061_v62 }
 0x142   : > { %1066 = vmatpush1.bf16.msk.msra.mxu0 %vm1593_vm15, %v1064_v63  ;;  %v492_v8 = vsel %vm490_vm6, %v1192_v5, %v1193_v4 }
 0x143   : > { %v485_v9 = vpop.permute.xlu1 %484  ;;  %v1067_v10 = vpack.c.bf16 %v492_v8, %v471_v7  ;;  %v504_v14 = vpop.permute.xlu0 %503 }
 0x144   : > { %v491_v12 = vsel %vm490_vm6, %v485_v9, %v1192_v5  ;;  %v510_v18 = vsel %vm1757_vm7, %v504_v14, %v506_v6 }
 0x145   : > { %v1070_v13 = vpack.c.bf16 %v491_v12, %v470_v11  ;;  %1069 = vmatprep.subr.msk.bf16.mxu0 %vm1531_vm8, %v1067_v10 }
 0x147   : > { %v508_v15 = vpop.permute.xlu1 %507  ;;  %1072 = vmatpush1.bf16.msk.msra.mxu0 %vm1541_vm10, %v1070_v13 }
 0x148   : > { %v511_v16 = vsel %vm1757_vm7, %v506_v6, %v508_v15  ;;  %vm1788_vm7 = vmpackc.low %vm1523_vm5, %vm1549_vm12 }
 0x149   : > { %1035 = vmatprep.subr.msk.mxu0 %vm1545_vm11, %v511_v16 }
 0x14b   : > { %1036 = vmatpush1.msk.msra.mxu0 %vm1549_vm12, %v510_v18 }
 0x14c   : > { %1016 = vmatmul.mubr.msk.f32.vlgmr.msra.gmra.mrb[0].mxu0 %vm1756_vm0, %v518_v17 }
 0x154   : > { %v624_v21 = vpop.permute.xlu0 %623 }
 0x158   : > { %v616_v19 = vpop.permute.xlu1 %615 }
 0x21f   : > { %v607_v20 = vpop.f32.mrb[0].mxu0 }
 0x220   : > { %v618_v22 = vmul.f32 %v616_v19, %v607_v20  ;;  %v609_v23 = vpop.f32.mrb[1].mxu0 }
 0x221   : > { %v619_v24 = vmul.f32 %v616_v19, %v609_v23 }
 0x222   : > { %v626_v26 = vadd.f32 %v624_v21, %v618_v22 }
 0x223   : > { %v627_v27 = vadd.f32 %v624_v21, %v619_v24 }
 0x224   : > { %v628_v29 = vmax.f32 %v626_v26, 0.0 }
 0x225   : > { %v629_v30 = vmax.f32 %v627_v27, 0.0 }
 0x226   : > { %635 = vrot.lane.b32.xlu1 %v628_v29, %s1329_s18 }
 0x22a   : > { %637 = vrot.lane.b32.xlu1 %v629_v30, %s1329_s18  ;;  %s1340_s18 = smov [#allocation9]  }
 0x298   : > { %v636_v31 = vpop.permute.xlu1 %635 }
 0x299   : > { %643 = vst.msk [vmem:[#allocation4] sm:$0xff] %vm338_vm1, %v636_v31  ;;  %vm1781_vm1 = vcmask 1031168  }
 0x29c   : > { %v638_v33 = vpop.permute.xlu1 %637 }
 0x29d   : > { %v639_v34 = vsel %vm333_vm2, %v636_v31, %v638_v33  ;;  %645 = vst.msk [vmem:[#allocation4 + $0x10] sm:$0xff] %vm333_vm2, %v638_v33  ;;  %vm1782_vm2 = vmmov %vm1781_vm1 }
 0x2a0   : > { %v670_v35 = vld [vmem:[#allocation4] sm:$0xff] }
 0x2a1   : > { %676 = vrot.lane.b32.xlu0 %v670_v35, %s1330_s19  ;;  %658 = vrot.lane.b32.xlu1 %v670_v35, %s1331_s20 }
 0x2a4   : > { %v692_v36 = vld [vmem:[#allocation4 + $0x10] sm:$0xff] }
 0x2a5   : > { %716 = vrot.lane.b32.xlu0 %v670_v35, %s1332_s21  ;;  %696 = vrot.lane.b32.xlu1 %v670_v35, %s1333_s22  ;;  %v1206_v37 = vpack.i.bf16 %v692_v36, %v639_v34 }
 0x2a9   : > { %754 = vrot.lane.b32.xlu0 %v670_v35, %s1334_s23  ;;  %734 = vrot.lane.b32.xlu1 %v670_v35, %s1335_s29 }
 0x2ad   : > { %1207 = vrot.lane.b32.xlu1 %v1206_v37, %s1333_s22  ;;  %1197 = vrot.lane.b32.xlu0 %v1206_v37, %s1331_s20 }
 0x2b1   : > { %1217 = vrot.lane.b32.xlu1 %v1206_v37, %s1335_s29  ;;  %1202 = vrot.lane.b32.xlu0 %v1206_v37, %s1330_s19  ;;  %s1263_s19 = sshll.u32 %s1340_s18, 4  ;;  %s1264_s19 = int_to_ptr.vmem [resolvable:$false] %s1263_s19 }
 0x2b2   : > { %s1265_s20 = scalar_lea.vmem %s1264_s19, 512 }
 0x2b5   : > { %1227 = vrot.lane.b32.xlu1 %v1206_v37, %s1337_s9  ;;  %1212 = vrot.lane.b32.xlu0 %v1206_v37, %s1332_s21 }
 0x2b9   : > { %774 = vrot.lane.b32.xlu1 %v670_v35, %s1337_s9  ;;  %1222 = vrot.lane.b32.xlu0 %v1206_v37, %s1334_s23  ;;  %v806_v37 = vld [vmem:[%s1744_s4] sm:$0xff]  ;;  %s282_s23 = sand.u32 1, %s1317_s25  }
 0x2ba   : > { %s1013_s29 = sshll.u32 %s282_s23, 4  ;;  %s922_s17 = scalar_lea.sflag [#allocation8], %s282_s23 }
 0x2bb   : > { %s284_s9 = scalar_lea.vmem [#allocation9], %s1013_s29 }
 0x2bc   : > { %s936_s14 = sshll.u32 %s284_s9, 4  ;;  %s1700_s14 = int_to_ptr.vmem [resolvable:$true] %s936_s14 }
 0x2bd   : > { %796 = vrot.lane.b32.xlu1 %v692_v36, %s1336_s8  ;;  %794 = vrot.lane.b32.xlu0 %v639_v34, %s1336_s8  ;;  %p1266_p2 = scmp.lt.s32.totalorder %s1700_s14, %s1264_s19 }
 0x2c1   : > { %902 = vperm.xlu1 %1194, %v899_v40   ;;  %792 = vrot.lane.b32.xlu0 %v670_v35, %s1336_s8  ;;  %s1024_s8 = sshll.u32 %s1402_s28, 8  ;;  %s1259_s28 = scalar_lea.vmem %s1700_s14, 256 }
 0x2c2   : > { %s1698_s16 = scalar_lea.hbm %s1747_s7, %s1024_s8  ;;  %p1260_p5 = scmp.ne.s32.totalorder %s1700_s14, %s1259_s28 }
 0x2c3   : > { %p1267_p3 = scmp.lt.s32.totalorder %s1265_s20, %s1259_s28 }
 0x2c4   : > { %p1261_p10 = pnand %p1260_p5, %p1792_p9 }
 0x2c5   : > { %910 = vperm.xlu0 %1195, %v907_v41   ;;  %p1268_p4 = por %p1267_p3, %p1266_p2 }
 0x2c6   : > { %p1262_p12 = pneg %p1261_p10 }
 0x2c8   : > { %p1269_p7 = pnand %p1268_p4, %p1262_p12 }
 0x313   : > { %v677_v43 = vpop.permute.xlu0 %676  ;;  %v659_v44 = vpop.permute.xlu1 %658 }
 0x317   : > { %v717_v45 = vpop.permute.xlu0 %716  ;;  %v697_v46 = vpop.permute.xlu1 %696 }
 0x31b   : > { %v755_v47 = vpop.permute.xlu0 %754  ;;  %v735_v48 = vpop.permute.xlu1 %734 }
 0x31f   : > { %v1198_v49 = vpop.permute.xlu0 %1197  ;;  %v1208_v50 = vpop.permute.xlu1 %1207 }
 0x320   : > { %v1200_v51 = vunpack.i.h.bf16 %v1198_v49  ;;  %v1199_v52 = vunpack.i.l.bf16 %v1198_v49  ;;  %v1210_v53 = vunpack.i.h.bf16 %v1208_v50  ;;  %v1209_v54 = vunpack.i.l.bf16 %v1208_v50 }
 0x322   : > { %v665_v55 = vsel %vm364_vm4, %v1199_v52, %v1200_v51  ;;  %v664_v56 = vsel %vm364_vm4, %v659_v44, %v1199_v52  ;;  %v702_v5 = vsel %vm408_vm9, %v697_v46, %v1209_v54  ;;  %v703_v6 = vsel %vm408_vm9, %v1209_v54, %v1210_v53  ;;  %vm1785_vm9 = vmpackc.low %vm1519_vm3, %vm1545_vm11 }
 0x323   : > { %v1203_v57 = vpop.permute.xlu0 %1202  ;;  %v1218_v58 = vpop.permute.xlu1 %1217  ;;  %v1073_v59 = vpack.c.bf16 %v665_v55, %v639_v34  ;;  %v1076_v60 = vpack.c.bf16 %v664_v56, %v670_v35  ;;  %vm1783_vm4 = vcmask 900096   ;;  %vm1789_vm3 = vcmask 769024  }
 0x324   : > { %v1205_v62 = vunpack.i.h.bf16 %v1203_v57  ;;  %v1204_v63 = vunpack.i.l.bf16 %v1203_v57  ;;  %v1220_v0 = vunpack.i.h.bf16 %v1218_v58  ;;  %v1219_v4 = vunpack.i.l.bf16 %v1218_v58  ;;  %vm1784_vm0 = vmmov %vm1783_vm4 }
 0x325   : > { %1075 = vmatprep.subr.msk.bf16.mxu1 %vm1531_vm8, %v1073_v59  ;;  %vm1790_vm5 = vmmov %vm1789_vm3 }
 0x326   : > { %v682_v7 = vsel %vm1781_vm1, %v677_v43, %v1204_v63  ;;  %v683_v8 = vsel %vm1782_vm2, %v1204_v63, %v1205_v62  ;;  %1078 = vmatpush1.bf16.msk.msra.mxu1 %vm1541_vm10, %v1076_v60  ;;  %v740_v15 = vsel %vm1783_vm4, %v735_v48, %v1219_v4  ;;  %v741_v16 = vsel %vm1784_vm0, %v1219_v4, %v1220_v0 }
 0x327   : > { %v1079_v9 = vpack.c.bf16 %v703_v6, %v683_v8  ;;  %v1082_v10 = vpack.c.bf16 %v702_v5, %v682_v7  ;;  %v1213_v11 = vpop.permute.xlu0 %1212  ;;  %v1228_v12 = vpop.permute.xlu1 %1227  ;;  %vm1786_vm1 = vcmask 908288  }
 0x328   : > { %v1215_v13 = vunpack.i.h.bf16 %v1213_v11  ;;  %v1214_v14 = vunpack.i.l.bf16 %v1213_v11  ;;  %vm1787_vm2 = vmmov %vm1786_vm1  ;;  %v1230_v19 = vunpack.i.h.bf16 %v1228_v12  ;;  %v1229_v20 = vunpack.i.l.bf16 %v1228_v12 }
 0x329   : > { %1081 = vmatprep.subr.msk.bf16.mxu1 %vm1785_vm9, %v1079_v9 }
 0x32a   : > { %v722_v17 = vsel %vm1786_vm1, %v717_v45, %v1214_v14  ;;  %v723_v18 = vsel %vm1787_vm2, %v1214_v14, %v1215_v13  ;;  %1084 = vmatpush1.bf16.msk.msra.mxu1 %vm1788_vm7, %v1082_v10  ;;  %v781_v27 = vsel %vm490_vm6, %v1229_v20, %v1230_v19 }
 0x32b   : > { %v1085_v21 = vpack.c.bf16 %v741_v16, %v723_v18  ;;  %v1088_v22 = vpack.c.bf16 %v740_v15, %v722_v17  ;;  %v1223_v23 = vpop.permute.xlu0 %1222  ;;  %v775_v25 = vpop.permute.xlu1 %774 }
 0x32c   : > { %v1225_v24 = vunpack.i.h.bf16 %v1223_v23  ;;  %v1224_v26 = vunpack.i.l.bf16 %v1223_v23  ;;  %v780_v28 = vsel %vm490_vm6, %v775_v25, %v1229_v20  ;;  %vm1791_vm6 = vcmask 588800  }
 0x32d   : > { %1087 = vmatprep.subr.msk.bf16.mxu1 %vm1586_vm13, %v1085_v21 }
 0x32e   : > { %v761_v29 = vsel %vm469_vm14, %v1224_v26, %v1225_v24  ;;  %v760_v30 = vsel %vm469_vm14, %v755_v47, %v1224_v26  ;;  %1090 = vmatpush1.bf16.msk.msra.mxu1 %vm1593_vm15, %v1088_v22 }
 0x32f   : > { %v1091_v31 = vpack.c.bf16 %v781_v27, %v761_v29  ;;  %v1094_v33 = vpack.c.bf16 %v780_v28, %v760_v30  ;;  %v795_v34 = vpop.permute.xlu0 %794  ;;  %v797_v35 = vpop.permute.xlu1 %796 }
 0x330   : > { %v799_v61 = vsel %vm1789_vm3, %v795_v34, %v797_v35 }
 0x331   : > { %1093 = vmatprep.subr.msk.bf16.mxu1 %vm1531_vm8, %v1091_v31 }
 0x332   : > { %1096 = vmatpush1.bf16.msk.msra.mxu1 %vm1541_vm10, %v1094_v33 }
 0x333   : > { %v793_v36 = vpop.permute.xlu0 %792  ;;  %1047 = vmatprep.subr.msk.mxu1 %vm1545_vm11, %v799_v61 }
 0x334   : > { %v798_v3 = vsel %vm1790_vm5, %v793_v36, %v795_v34 }
 0x336   : > { %1048 = vmatpush1.msk.msra.mxu1 %vm1549_vm12, %v798_v3 }
 0x337   : > { %1017 = vmatmul.mubr.msk.f32.vlgmr.msra.gmra.mrb[0].mxu1 %vm1791_vm6, %v806_v37 }
 0x340   : > { %v903_v32 = vpop.permute.xlu1 %902 }
 0x344   : > { %v911_v39 = vpop.permute.xlu0 %910 }
 0x40a   : > { %v894_v38 = vpop.f32.mrb[0].mxu1 }
 0x40b   : > { %v905_v40 = vmul.f32 %v903_v32, %v894_v38  ;;  %v896_v41 = vpop.f32.mrb[1].mxu1 }
 0x40c   : > { %v906_v43 = vmul.f32 %v903_v32, %v896_v41 }
 0x40d   : > { %v913_v44 = vadd.f32 %v911_v39, %v905_v40 }
 0x40e   : > { %v914_v45 = vadd.f32 %v911_v39, %v906_v43 }
 0x40f   : > { %v915_v46 = vadd.f32 %v913_v44, %v1469_v1 }
 0x410   : > { %v916_v42 = vadd.f32 %v914_v45, %v1473_v2 }
 0x411   : > { %v917_v47 = vmax.f32 %v915_v46, 0.0 }
 0x412   : > { %v918_v48 = vmax.f32 %v916_v42, 0.0 }
 0x413   : > { %919 = vst [vmem:[%s284_s9] sm:$0xff] %v917_v47 }
 0x414   : > { %920 = vst [vmem:[%s284_s9 + $0x8] sm:$0xff] %v918_v48 }
 0x415   : > { %1272 = shalt.err (!%p1269_p7)
}
 0x416   : > { %s1273_s21 = scalar_lea.hbm %s1698_s16, 256  ;;  %s1277_s29 = scalar_lea.hbm %s1747_s7, 512 }
 0x417   : > { %p1274_p8 = scmp.ne.s32.totalorder %s1698_s16, %s1273_s21  ;;  %p1278_p1 = scmp.lt.u32.totalorder %s1698_s16, %s1747_s7 }
 0x418   : > { %p1279_p0 = scmp.lt.u32.totalorder %s1277_s29, %s1273_s21  ;;  %p1281_p5 = scmp.lt.u32.totalorder %s1273_s21, %s1698_s16 }
 0x419   : > { %p1275_p11 = pnand %p1274_p8, %p1792_p9 }
 0x41a   : > { %p1280_p6 = por %p1279_p0, %p1278_p1 }
 0x41b   : > { %p1276_p13 = pneg %p1275_p11 }
 0x41c   : > { %p1282_p10 = por %p1281_p5, %p1280_p6 }
 0x41e   : > { %p1283_p12 = pnand %p1282_p10, %p1276_p13 }
 0x420   : > { %1286 = shalt.err (!%p1283_p12)
}
 0x421   : > { %1101 = dma.vmem_to_hbm [thread:$0]  (%p1792_p9), %s1700_s14, 256, %s1698_s16, %s922_s17  }
 0x422 PF: > { %p1113_p2 = scmp.ge.s32.totalorder %s1325_s27, 2  ;;  %s948_s13 = sand.u32 1, %s1313_s24  }
 0x423   : > { %p1793_p3 = scmp.ne.s32.totalorder %s1759_s12, 0  ;;  %s949_s15 = scalar_lea.sflag [#allocation8], %s948_s13 }
 0x425   : > { %p1108_p4 = pnand %p1113_p2, %p1793_p3 }
 0x427   : > { %1308 = dma.done.wait (!%p1108_p4), %s949_s15, 256  }
 0x428   : > { %1310 = vsyncadd (!%p1108_p4), %s949_s15, 4294967040  ;;  %p18_p7 = scmp.ge.s32.totalorder %s1406_s30, 4   ;;  %s1794_s24 = smov %s1317_s25 }
 0x429   : > { %s1795_s25 = smov %s1321_s26  ;;  %s1796_s26 = smov %s1417_s10 }
 0x42a   : > { %s1797_s27 = smov %s1406_s30  ;;  %20 = sbr.rel (!%p18_p7) target bundleno = 4 (0x4), region = 88 }
 0x431   :  { %954 = vsyncpa [#allocation7], 1 }
 0x432   :  { %956 = vsyncpa [#allocation7 + $0x1], 1 }
 0x433   :  { %957 = vsyncpa [#allocation8], 1 }
 0x434   :  { %959 = vsyncpa [#allocation8 + $0x1], 1 }

</bundles_post_ra>
